<compile_context>
chip_gen: v7x
topology: tpu7x:2x2x1
jax: 0.10.0
libtpu: 0.0.40
codegen_flags: <defaults>
</compile_context>

<pallas_src>
import functools
import math

import jax
import jax.numpy as jnp
from jax.experimental import pallas as pl
from jax.experimental.pallas import tpu as pltpu

_NEG_INF = -1e30  # large-negative additive mask (avoids -inf NaN corner cases)


def _mha_kernel(x_ref, mask_ref, wqkv_ref, bqkv_ref, wo_ref, bo_ref, out_ref,
                *, num_heads, batch_block, seq_len):
    # x_ref:    (Nb*L, E)   flattened batch-block of inputs (compute dtype)
    # mask_ref: (Nb, 1, L)  additive key-padding mask (f32: 0 or -1e30)
    # wqkv_ref: (E, 3E)     in_proj_weight^T, Q columns pre-scaled by 1/sqrt(hd)
    # bqkv_ref: (1, 3E)     in_proj_bias (f32, Q part pre-scaled)
    # wo_ref:   (E, E)      out_proj.weight^T
    # bo_ref:   (1, E)      out_proj.bias (f32)
    # out_ref:  (Nb*L, E)   f32 output
    Nb, L = batch_block, seq_len
    E = x_ref.shape[-1]
    hd = E // num_heads
    mm_dtype = wqkv_ref.dtype          # matmul-input dtype (f32 or bf16)

    wqkv = wqkv_ref[...]
    wo = wo_ref[...]
    bo = bo_ref[...]

    # Fused QKV projection on the whole (Nb*L, E) slab: fills MXU sublanes and
    # amortizes per-grid-step overhead.  MXU accumulates in f32.
    qkv = (jnp.dot(x_ref[...], wqkv, preferred_element_type=jnp.float32)
           + bqkv_ref[...])                                        # (Nb*L, 3E)

    for b in range(Nb):                       # static: per-sample attention
        rows = slice(b * L, (b + 1) * L)
        q = qkv[rows, 0 * E:1 * E].astype(mm_dtype)  # already 1/sqrt(hd) scaled
        k = qkv[rows, 1 * E:2 * E].astype(mm_dtype)
        v = qkv[rows, 2 * E:3 * E].astype(mm_dtype)
        # Hoisted out of the head loop (broadcast_in_dim is not CSE'd).
        mask_b = jnp.broadcast_to(mask_ref[b], (L, L))             # (L, L) f32

        acc = jnp.zeros((L, E), jnp.float32)
        for h in range(num_heads):            # static; Wo folded in, no concat
            hs = slice(h * hd, (h + 1) * hd)
            # scores = q_h @ k_h^T (contraction over the head dim).
            s = jax.lax.dot_general(
                q[:, hs], k[:, hs],
                dimension_numbers=(((1,), (1,)), ((), ())),
                preferred_element_type=jnp.float32)                # (L, L) f32
            s = s + mask_b
            p = jnp.exp(s - jnp.max(s, axis=-1, keepdims=True))    # unnormalized
            # Deferred normalization: EUP reciprocal of the row-sum + one
            # Newton step ((L,1) ops) instead of an (L,L) divide per head.
            l_row = jnp.sum(p, axis=-1, keepdims=True)             # (L, 1)
            inv_l = pl.reciprocal(l_row, approx=True)
            inv_l = inv_l * (2.0 - l_row * inv_l)                  # f32-accurate
            o_h = jnp.dot(p.astype(mm_dtype), v[:, hs],
                          preferred_element_type=jnp.float32) * inv_l  # (L, hd)
            # Fold the output projection; sublane slice of Wo is free.
            acc = acc + jnp.dot(o_h.astype(mm_dtype), wo[hs, :],
                                preferred_element_type=jnp.float32)
        out_ref[rows, :] = (acc + bo).astype(out_ref.dtype)


def _pick_batch_block(n, seq_len, target_rows=256):
    """Largest divisor Nb of n with Nb*seq_len <= target_rows.

    Bigger batch blocks amortize the ~0.35us per-grid-step overhead (the grid
    is a serial loop on a single TensorCore).  For large n the remaining grid
    steps are sharded across TensorCores via dimension_semantics=('parallel',).
    """
    best = 1
    for d in range(1, n + 1):
        if n % d == 0 and d * seq_len <= max(target_rows, seq_len):
            best = d
    return best


@functools.partial(jax.jit, static_argnames=("num_heads", "compute_dtype"))
def top_self_attention2(x, mask, in_proj_w, in_proj_b, out_proj_w, out_proj_b,
                        *, num_heads, compute_dtype=jnp.float32):
    """Equivalent of MultiheadAttention(x, x, x, key_padding_mask=mask.T)[0].

    x:    (L, N, E) float  (seq, batch, embed), torch batch_first=False layout
    mask: (L, N)    nonzero / True => that key position is masked out
    compute_dtype: dtype for matmul inputs (jnp.bfloat16 on v6e/v7x for
                   MXU-native matmuls; softmax/mask/accumulators stay f32).
    returns (L, N, E) float32
    """
    L, N, E = x.shape
    head_dim = E // num_heads
    scale = 1.0 / math.sqrt(head_dim)
    nb = _pick_batch_block(N, L)

    # --- layout plumbing, done once outside the kernel ----------------------
    x2d = jnp.transpose(x, (1, 0, 2)).reshape(N * L, E).astype(compute_dtype)
    key_pad = jnp.transpose(mask, (1, 0)).astype(bool)              # (N, L)
    mask_add = jnp.where(key_pad, jnp.float32(_NEG_INF),
                         jnp.float32(0.0)).reshape(N, 1, L)         # (N, 1, L)

    # Fold the 1/sqrt(head_dim) scale into the Q columns (one-time cost).
    col_scale = jnp.concatenate(
        [jnp.full((E,), scale, jnp.float32), jnp.ones((2 * E,), jnp.float32)])
    wqkv_t = (jnp.transpose(in_proj_w).astype(jnp.float32)
              * col_scale[None, :]).astype(compute_dtype)           # (E, 3E)
    bqkv = (in_proj_b.astype(jnp.float32) * col_scale)[None, :]     # (1, 3E) f32
    wo_t = jnp.transpose(out_proj_w).astype(compute_dtype)          # (E, E)
    bo = out_proj_b.astype(jnp.float32)[None, :]                    # (1, E)  f32

    kernel = functools.partial(_mha_kernel, num_heads=num_heads,
                               batch_block=nb, seq_len=L)

    out2d = pl.pallas_call(
        kernel,
        out_shape=jax.ShapeDtypeStruct((N * L, E), jnp.float32),
        grid_spec=pl.GridSpec(
            grid=(N // nb,),
            in_specs=[
                pl.BlockSpec((nb * L, E), lambda i: (i, 0)),
                pl.BlockSpec((nb, 1, L), lambda i: (i, 0, 0)),
                pl.BlockSpec((E, 3 * E), lambda i: (0, 0)),
                pl.BlockSpec((1, 3 * E), lambda i: (0, 0)),
                pl.BlockSpec((E, E), lambda i: (0, 0)),
                pl.BlockSpec((1, E), lambda i: (0, 0)),
            ],
            out_specs=pl.BlockSpec((nb * L, E), lambda i: (i, 0)),
        ),
        compiler_params=pltpu.CompilerParams(
            dimension_semantics=("parallel",)),
    )(x2d, mask_add, wqkv_t, bqkv, wo_t, bo)

    return jnp.transpose(out2d.reshape(N, L, E), (1, 0, 2))         # (L, N, E)


def _reference_mha(x, mask, in_w, in_b, out_w, out_b, num_heads):
    """Pure-JAX reference matching torch.nn.MultiheadAttention (eval mode)."""
    L, N, E = x.shape
    hd = E // num_heads
    scale = 1.0 / math.sqrt(hd)
    qkv = x @ in_w.T + in_b                                         # (L, N, 3E)
    q = qkv[..., 0 * E:1 * E] * scale
    k = qkv[..., 1 * E:2 * E]
    v = qkv[..., 2 * E:3 * E]

    def split_heads(t):
        return jnp.transpose(t.reshape(L, N, num_heads, hd), (1, 2, 0, 3))

    qh, kh, vh = split_heads(q), split_heads(k), split_heads(v)     # (N,H,L,hd)
    scores = jnp.einsum("nhqd,nhkd->nhqk", qh, kh)
    key_pad = jnp.transpose(mask, (1, 0)).astype(bool)              # (N, L)
    scores = scores + jnp.where(key_pad, _NEG_INF, 0.0)[:, None, None, :]
    p = jax.nn.softmax(scores, axis=-1)
    o = jnp.einsum("nhqk,nhkd->nhqd", p, vh)                        # (N,H,L,hd)
    o = jnp.transpose(o, (2, 0, 1, 3)).reshape(L, N, E)
    return o @ out_w.T + out_b


if __name__ == "__main__":
    L, N, E, H = 8, 2, 32, 4   # seq len, batch, embed dim, num heads
    droprate = 0.1             # no-op in eval-mode forward

    key = jax.random.PRNGKey(0)
    kx, k1, k2, k3, k4 = jax.random.split(key, 5)

    x = jax.random.normal(kx, (L, N, E), dtype=jnp.float32)
    # key padding mask as fed to the module (module applies mask.T internally):
    # mask out the last two key positions of batch element 1.
    mask = jnp.zeros((L, N), dtype=jnp.int32).at[L - 2:, 1].set(1)

    # torch.nn.MultiheadAttention-style parameters (deterministic uniform init)
    bound = 1.0 / math.sqrt(E)
    in_proj_w = jax.random.uniform(k1, (3 * E, E), jnp.float32, -bound, bound)
    in_proj_b = jax.random.uniform(k2, (3 * E,), jnp.float32, -bound, bound)
    out_proj_w = jax.random.uniform(k3, (E, E), jnp.float32, -bound, bound)
    out_proj_b = jax.random.uniform(k4, (E,), jnp.float32, -bound, bound)

    ref = jax.block_until_ready(
        _reference_mha(x, mask, in_proj_w, in_proj_b, out_proj_w, out_proj_b, H))

    # f32 matmul-input path (v5e default; tolerance slightly relaxed vs 1e-4
    # only because of the EUP approximate reciprocal).
    out_f32 = jax.block_until_ready(
        top_self_attention2(x, mask, in_proj_w, in_proj_b, out_proj_w,
                            out_proj_b, num_heads=H))
    assert out_f32.shape == (L, N, E)
    err_f32 = jnp.max(jnp.abs(out_f32 - ref))
    assert jnp.allclose(out_f32, ref, atol=1e-3, rtol=1e-3), \
        f"f32 path max abs err {err_f32}"

    # bf16 matmul-input path (v6e / v7x MXU-native); softmax math stays f32.
    out_bf16 = jax.block_until_ready(
        top_self_attention2(x, mask, in_proj_w, in_proj_b, out_proj_w,
                            out_proj_b, num_heads=H,
                            compute_dtype=jnp.bfloat16))
    err_bf16 = jnp.max(jnp.abs(out_bf16 - ref))
    assert jnp.allclose(out_bf16, ref, atol=5e-2, rtol=5e-2), \
        f"bf16 path max abs err {err_bf16}"

    print("KERNEL_OK")
</pallas_src>

<mosaic_0001>
module attributes {stable_mosaic.version = 11 : i64} {
  func.func @_mha_kernel(%arg0: i32, %arg1: memref<16x32xf32, #tpu.memory_space<vmem>>, %arg2: memref<2x1x8xf32, #tpu.memory_space<vmem>>, %arg3: memref<32x96xf32, #tpu.memory_space<vmem>>, %arg4: memref<1x96xf32, #tpu.memory_space<vmem>>, %arg5: memref<32x32xf32, #tpu.memory_space<vmem>>, %arg6: memref<1x32xf32, #tpu.memory_space<vmem>>, %arg7: memref<16x32xf32, #tpu.memory_space<vmem>>) attributes {dimension_semantics = [#tpu.dimension_semantics<parallel>], iteration_bounds = array<i64: 1>, scalar_prefetch = 0 : i64, scratch_operands = 0 : i64, tpu.core_type = #tpu.core_type<tc>, window_params = [{transform_indices = @transform_0, window_bounds = array<i64: 16, 32>}, {transform_indices = @transform_1, window_bounds = array<i64: 2, 1, 8>}, {pipeline_mode = #tpu.pipeline_mode<synchronous>, transform_indices = @transform_2, window_bounds = array<i64: 32, 96>}, {pipeline_mode = #tpu.pipeline_mode<synchronous>, transform_indices = @transform_3, window_bounds = array<i64: 1, 96>}, {pipeline_mode = #tpu.pipeline_mode<synchronous>, transform_indices = @transform_4, window_bounds = array<i64: 32, 32>}, {pipeline_mode = #tpu.pipeline_mode<synchronous>, transform_indices = @transform_5, window_bounds = array<i64: 1, 32>}, {transform_indices = @transform_6, window_bounds = array<i64: 16, 32>}]} {
    %c0 = arith.constant 0 : index
    %c0_0 = arith.constant 0 : index
    %0 = vector.load %arg3[%c0, %c0_0] : memref<32x96xf32, #tpu.memory_space<vmem>>, vector<32x96xf32>
    %c0_1 = arith.constant 0 : index
    %c0_2 = arith.constant 0 : index
    %1 = vector.load %arg5[%c0_1, %c0_2] : memref<32x32xf32, #tpu.memory_space<vmem>>, vector<32x32xf32>
    %c0_3 = arith.constant 0 : index
    %c0_4 = arith.constant 0 : index
    %2 = vector.load %arg6[%c0_3, %c0_4] : memref<1x32xf32, #tpu.memory_space<vmem>>, vector<1x32xf32>
    %c0_5 = arith.constant 0 : index
    %c0_6 = arith.constant 0 : index
    %3 = vector.load %arg1[%c0_5, %c0_6] : memref<16x32xf32, #tpu.memory_space<vmem>>, vector<16x32xf32>
    %cst = arith.constant dense<0.000000e+00> : vector<16x96xf32>
    %4 = tpu.matmul %3, %0, %cst {dimension_numbers = #tpu.dot_dimension_numbers<[1], [0], [0], [1], [0, 0, 1, 1], [], []>} : vector<16x32xf32>, vector<32x96xf32>, vector<16x96xf32> -> vector<16x96xf32>
    %c0_7 = arith.constant 0 : index
    %c0_8 = arith.constant 0 : index
    %5 = vector.load %arg4[%c0_7, %c0_8] : memref<1x96xf32, #tpu.memory_space<vmem>>, vector<1x96xf32>
    %6 = vector.broadcast %5 : vector<1x96xf32> to vector<16x96xf32>
    %7 = arith.addf %4, %6 : vector<16x96xf32>
    %8 = vector.extract_strided_slice %7 {offsets = [0, 0], sizes = [8, 32], strides = [1, 1]} : vector<16x96xf32> to vector<8x32xf32>
    %9 = vector.extract_strided_slice %7 {offsets = [0, 32], sizes = [8, 32], strides = [1, 1]} : vector<16x96xf32> to vector<8x32xf32>
    %10 = vector.extract_strided_slice %7 {offsets = [0, 64], sizes = [8, 32], strides = [1, 1]} : vector<16x96xf32> to vector<8x32xf32>
    %c0_9 = arith.constant 0 : index
    %c0_10 = arith.constant 0 : index
    %c0_11 = arith.constant 0 : index
    %11 = vector.load %arg2[%c0_9, %c0_10, %c0_11] : memref<2x1x8xf32, #tpu.memory_space<vmem>>, vector<1x1x8xf32>
    %12 = vector.shape_cast %11 : vector<1x1x8xf32> to vector<1x8xf32>
    %13 = vector.shape_cast %12 : vector<1x8xf32> to vector<1x8xf32>
    %14 = vector.broadcast %13 : vector<1x8xf32> to vector<8x8xf32>
    %cst_12 = arith.constant 0.000000e+00 : f32
    %15 = vector.broadcast %cst_12 : f32 to vector<8x32xf32>
    %16 = vector.extract_strided_slice %8 {offsets = [0, 0], sizes = [8, 8], strides = [1, 1]} : vector<8x32xf32> to vector<8x8xf32>
    %17 = vector.extract_strided_slice %9 {offsets = [0, 0], sizes = [8, 8], strides = [1, 1]} : vector<8x32xf32> to vector<8x8xf32>
    %cst_13 = arith.constant dense<0.000000e+00> : vector<8x8xf32>
    %18 = tpu.matmul %16, %17, %cst_13 {dimension_numbers = #tpu.dot_dimension_numbers<[1], [1], [0], [0], [0, 0, 1, 0], [], []>} : vector<8x8xf32>, vector<8x8xf32>, vector<8x8xf32> -> vector<8x8xf32>
    %19 = arith.addf %18, %14 : vector<8x8xf32>
    %cst_14 = arith.constant dense<0xFF800000> : vector<8xf32>
    %20 = vector.multi_reduction <maximumf>, %19, %cst_14 [1] : vector<8x8xf32> to vector<8xf32>
    %21 = vector.shape_cast %20 : vector<8xf32> to vector<8x1xf32>
    %22 = vector.broadcast %21 : vector<8x1xf32> to vector<8x8xf32>
    %23 = arith.subf %19, %22 : vector<8x8xf32>
    %24 = math.exp %23 : vector<8x8xf32>
    %cst_15 = arith.constant dense<0.000000e+00> : vector<8xf32>
    %25 = vector.multi_reduction <add>, %24, %cst_15 [1] : vector<8x8xf32> to vector<8xf32>
    %26 = vector.shape_cast %25 : vector<8xf32> to vector<8x1xf32>
    %27 = tpu.reciprocal %26 {approx = true} : vector<8x1xf32> -> vector<8x1xf32>
    %28 = arith.mulf %26, %27 : vector<8x1xf32>
    %cst_16 = arith.constant 2.000000e+00 : f32
    %29 = vector.broadcast %cst_16 : f32 to vector<8x1xf32>
    %30 = arith.subf %29, %28 : vector<8x1xf32>
    %31 = arith.mulf %27, %30 : vector<8x1xf32>
    %32 = vector.extract_strided_slice %10 {offsets = [0, 0], sizes = [8, 8], strides = [1, 1]} : vector<8x32xf32> to vector<8x8xf32>
    %cst_17 = arith.constant dense<0.000000e+00> : vector<8x8xf32>
    %33 = tpu.matmul %24, %32, %cst_17 {dimension_numbers = #tpu.dot_dimension_numbers<[1], [0], [0], [1], [0, 0, 1, 1], [], []>} : vector<8x8xf32>, vector<8x8xf32>, vector<8x8xf32> -> vector<8x8xf32>
    %34 = vector.broadcast %31 : vector<8x1xf32> to vector<8x8xf32>
    %35 = arith.mulf %33, %34 : vector<8x8xf32>
    %36 = vector.extract_strided_slice %1 {offsets = [0, 0], sizes = [8, 32], strides = [1, 1]} : vector<32x32xf32> to vector<8x32xf32>
    %cst_18 = arith.constant dense<0.000000e+00> : vector<8x32xf32>
    %37 = tpu.matmul %35, %36, %cst_18 {dimension_numbers = #tpu.dot_dimension_numbers<[1], [0], [0], [1], [0, 0, 1, 1], [], []>} : vector<8x8xf32>, vector<8x32xf32>, vector<8x32xf32> -> vector<8x32xf32>
    %38 = arith.addf %15, %37 : vector<8x32xf32>
    %39 = vector.extract_strided_slice %8 {offsets = [0, 8], sizes = [8, 8], strides = [1, 1]} : vector<8x32xf32> to vector<8x8xf32>
    %40 = vector.extract_strided_slice %9 {offsets = [0, 8], sizes = [8, 8], strides = [1, 1]} : vector<8x32xf32> to vector<8x8xf32>
    %cst_19 = arith.constant dense<0.000000e+00> : vector<8x8xf32>
    %41 = tpu.matmul %39, %40, %cst_19 {dimension_numbers = #tpu.dot_dimension_numbers<[1], [1], [0], [0], [0, 0, 1, 0], [], []>} : vector<8x8xf32>, vector<8x8xf32>, vector<8x8xf32> -> vector<8x8xf32>
    %42 = arith.addf %41, %14 : vector<8x8xf32>
    %cst_20 = arith.constant dense<0xFF800000> : vector<8xf32>
    %43 = vector.multi_reduction <maximumf>, %42, %cst_20 [1] : vector<8x8xf32> to vector<8xf32>
    %44 = vector.shape_cast %43 : vector<8xf32> to vector<8x1xf32>
    %45 = vector.broadcast %44 : vector<8x1xf32> to vector<8x8xf32>
    %46 = arith.subf %42, %45 : vector<8x8xf32>
    %47 = math.exp %46 : vector<8x8xf32>
    %cst_21 = arith.constant dense<0.000000e+00> : vector<8xf32>
    %48 = vector.multi_reduction <add>, %47, %cst_21 [1] : vector<8x8xf32> to vector<8xf32>
    %49 = vector.shape_cast %48 : vector<8xf32> to vector<8x1xf32>
    %50 = tpu.reciprocal %49 {approx = true} : vector<8x1xf32> -> vector<8x1xf32>
    %51 = arith.mulf %49, %50 : vector<8x1xf32>
    %cst_22 = arith.constant 2.000000e+00 : f32
    %52 = vector.broadcast %cst_22 : f32 to vector<8x1xf32>
    %53 = arith.subf %52, %51 : vector<8x1xf32>
    %54 = arith.mulf %50, %53 : vector<8x1xf32>
    %55 = vector.extract_strided_slice %10 {offsets = [0, 8], sizes = [8, 8], strides = [1, 1]} : vector<8x32xf32> to vector<8x8xf32>
    %cst_23 = arith.constant dense<0.000000e+00> : vector<8x8xf32>
    %56 = tpu.matmul %47, %55, %cst_23 {dimension_numbers = #tpu.dot_dimension_numbers<[1], [0], [0], [1], [0, 0, 1, 1], [], []>} : vector<8x8xf32>, vector<8x8xf32>, vector<8x8xf32> -> vector<8x8xf32>
    %57 = vector.broadcast %54 : vector<8x1xf32> to vector<8x8xf32>
    %58 = arith.mulf %56, %57 : vector<8x8xf32>
    %59 = vector.extract_strided_slice %1 {offsets = [8, 0], sizes = [8, 32], strides = [1, 1]} : vector<32x32xf32> to vector<8x32xf32>
    %cst_24 = arith.constant dense<0.000000e+00> : vector<8x32xf32>
    %60 = tpu.matmul %58, %59, %cst_24 {dimension_numbers = #tpu.dot_dimension_numbers<[1], [0], [0], [1], [0, 0, 1, 1], [], []>} : vector<8x8xf32>, vector<8x32xf32>, vector<8x32xf32> -> vector<8x32xf32>
    %61 = arith.addf %38, %60 : vector<8x32xf32>
    %62 = vector.extract_strided_slice %8 {offsets = [0, 16], sizes = [8, 8], strides = [1, 1]} : vector<8x32xf32> to vector<8x8xf32>
    %63 = vector.extract_strided_slice %9 {offsets = [0, 16], sizes = [8, 8], strides = [1, 1]} : vector<8x32xf32> to vector<8x8xf32>
    %cst_25 = arith.constant dense<0.000000e+00> : vector<8x8xf32>
    %64 = tpu.matmul %62, %63, %cst_25 {dimension_numbers = #tpu.dot_dimension_numbers<[1], [1], [0], [0], [0, 0, 1, 0], [], []>} : vector<8x8xf32>, vector<8x8xf32>, vector<8x8xf32> -> vector<8x8xf32>
    %65 = arith.addf %64, %14 : vector<8x8xf32>
    %cst_26 = arith.constant dense<0xFF800000> : vector<8xf32>
    %66 = vector.multi_reduction <maximumf>, %65, %cst_26 [1] : vector<8x8xf32> to vector<8xf32>
    %67 = vector.shape_cast %66 : vector<8xf32> to vector<8x1xf32>
    %68 = vector.broadcast %67 : vector<8x1xf32> to vector<8x8xf32>
    %69 = arith.subf %65, %68 : vector<8x8xf32>
    %70 = math.exp %69 : vector<8x8xf32>
    %cst_27 = arith.constant dense<0.000000e+00> : vector<8xf32>
    %71 = vector.multi_reduction <add>, %70, %cst_27 [1] : vector<8x8xf32> to vector<8xf32>
    %72 = vector.shape_cast %71 : vector<8xf32> to vector<8x1xf32>
    %73 = tpu.reciprocal %72 {approx = true} : vector<8x1xf32> -> vector<8x1xf32>
    %74 = arith.mulf %72, %73 : vector<8x1xf32>
    %cst_28 = arith.constant 2.000000e+00 : f32
    %75 = vector.broadcast %cst_28 : f32 to vector<8x1xf32>
    %76 = arith.subf %75, %74 : vector<8x1xf32>
    %77 = arith.mulf %73, %76 : vector<8x1xf32>
    %78 = vector.extract_strided_slice %10 {offsets = [0, 16], sizes = [8, 8], strides = [1, 1]} : vector<8x32xf32> to vector<8x8xf32>
    %cst_29 = arith.constant dense<0.000000e+00> : vector<8x8xf32>
    %79 = tpu.matmul %70, %78, %cst_29 {dimension_numbers = #tpu.dot_dimension_numbers<[1], [0], [0], [1], [0, 0, 1, 1], [], []>} : vector<8x8xf32>, vector<8x8xf32>, vector<8x8xf32> -> vector<8x8xf32>
    %80 = vector.broadcast %77 : vector<8x1xf32> to vector<8x8xf32>
    %81 = arith.mulf %79, %80 : vector<8x8xf32>
    %82 = vector.extract_strided_slice %1 {offsets = [16, 0], sizes = [8, 32], strides = [1, 1]} : vector<32x32xf32> to vector<8x32xf32>
    %cst_30 = arith.constant dense<0.000000e+00> : vector<8x32xf32>
    %83 = tpu.matmul %81, %82, %cst_30 {dimension_numbers = #tpu.dot_dimension_numbers<[1], [0], [0], [1], [0, 0, 1, 1], [], []>} : vector<8x8xf32>, vector<8x32xf32>, vector<8x32xf32> -> vector<8x32xf32>
    %84 = arith.addf %61, %83 : vector<8x32xf32>
    %85 = vector.extract_strided_slice %8 {offsets = [0, 24], sizes = [8, 8], strides = [1, 1]} : vector<8x32xf32> to vector<8x8xf32>
    %86 = vector.extract_strided_slice %9 {offsets = [0, 24], sizes = [8, 8], strides = [1, 1]} : vector<8x32xf32> to vector<8x8xf32>
    %cst_31 = arith.constant dense<0.000000e+00> : vector<8x8xf32>
    %87 = tpu.matmul %85, %86, %cst_31 {dimension_numbers = #tpu.dot_dimension_numbers<[1], [1], [0], [0], [0, 0, 1, 0], [], []>} : vector<8x8xf32>, vector<8x8xf32>, vector<8x8xf32> -> vector<8x8xf32>
    %88 = arith.addf %87, %14 : vector<8x8xf32>
    %cst_32 = arith.constant dense<0xFF800000> : vector<8xf32>
    %89 = vector.multi_reduction <maximumf>, %88, %cst_32 [1] : vector<8x8xf32> to vector<8xf32>
    %90 = vector.shape_cast %89 : vector<8xf32> to vector<8x1xf32>
    %91 = vector.broadcast %90 : vector<8x1xf32> to vector<8x8xf32>
    %92 = arith.subf %88, %91 : vector<8x8xf32>
    %93 = math.exp %92 : vector<8x8xf32>
    %cst_33 = arith.constant dense<0.000000e+00> : vector<8xf32>
    %94 = vector.multi_reduction <add>, %93, %cst_33 [1] : vector<8x8xf32> to vector<8xf32>
    %95 = vector.shape_cast %94 : vector<8xf32> to vector<8x1xf32>
    %96 = tpu.reciprocal %95 {approx = true} : vector<8x1xf32> -> vector<8x1xf32>
    %97 = arith.mulf %95, %96 : vector<8x1xf32>
    %cst_34 = arith.constant 2.000000e+00 : f32
    %98 = vector.broadcast %cst_34 : f32 to vector<8x1xf32>
    %99 = arith.subf %98, %97 : vector<8x1xf32>
    %100 = arith.mulf %96, %99 : vector<8x1xf32>
    %101 = vector.extract_strided_slice %10 {offsets = [0, 24], sizes = [8, 8], strides = [1, 1]} : vector<8x32xf32> to vector<8x8xf32>
    %cst_35 = arith.constant dense<0.000000e+00> : vector<8x8xf32>
    %102 = tpu.matmul %93, %101, %cst_35 {dimension_numbers = #tpu.dot_dimension_numbers<[1], [0], [0], [1], [0, 0, 1, 1], [], []>} : vector<8x8xf32>, vector<8x8xf32>, vector<8x8xf32> -> vector<8x8xf32>
    %103 = vector.broadcast %100 : vector<8x1xf32> to vector<8x8xf32>
    %104 = arith.mulf %102, %103 : vector<8x8xf32>
    %105 = vector.extract_strided_slice %1 {offsets = [24, 0], sizes = [8, 32], strides = [1, 1]} : vector<32x32xf32> to vector<8x32xf32>
    %cst_36 = arith.constant dense<0.000000e+00> : vector<8x32xf32>
    %106 = tpu.matmul %104, %105, %cst_36 {dimension_numbers = #tpu.dot_dimension_numbers<[1], [0], [0], [1], [0, 0, 1, 1], [], []>} : vector<8x8xf32>, vector<8x32xf32>, vector<8x32xf32> -> vector<8x32xf32>
    %107 = arith.addf %84, %106 : vector<8x32xf32>
    %108 = vector.broadcast %2 : vector<1x32xf32> to vector<8x32xf32>
    %109 = arith.addf %107, %108 : vector<8x32xf32>
    %c0_37 = arith.constant 0 : index
    %c0_38 = arith.constant 0 : index
    %110 = vector.load %arg7[%c0_37, %c0_38] : memref<16x32xf32, #tpu.memory_space<vmem>>, vector<8x32xf32>
    tpu.vector_store %arg7[%c0_37, %c0_38], %109 {strides = array<i32>} : memref<16x32xf32, #tpu.memory_space<vmem>>, vector<8x32xf32>,
    %111 = vector.extract_strided_slice %7 {offsets = [8, 0], sizes = [8, 32], strides = [1, 1]} : vector<16x96xf32> to vector<8x32xf32>
    %112 = vector.extract_strided_slice %7 {offsets = [8, 32], sizes = [8, 32], strides = [1, 1]} : vector<16x96xf32> to vector<8x32xf32>
    %113 = vector.extract_strided_slice %7 {offsets = [8, 64], sizes = [8, 32], strides = [1, 1]} : vector<16x96xf32> to vector<8x32xf32>
    %c1 = arith.constant 1 : index
    %c0_39 = arith.constant 0 : index
    %c0_40 = arith.constant 0 : index
    %114 = vector.load %arg2[%c1, %c0_39, %c0_40] : memref<2x1x8xf32, #tpu.memory_space<vmem>>, vector<1x1x8xf32>
    %115 = vector.shape_cast %114 : vector<1x1x8xf32> to vector<1x8xf32>
    %116 = vector.shape_cast %115 : vector<1x8xf32> to vector<1x8xf32>
    %117 = vector.broadcast %116 : vector<1x8xf32> to vector<8x8xf32>
    %cst_41 = arith.constant 0.000000e+00 : f32
    %118 = vector.broadcast %cst_41 : f32 to vector<8x32xf32>
    %119 = vector.extract_strided_slice %111 {offsets = [0, 0], sizes = [8, 8], strides = [1, 1]} : vector<8x32xf32> to vector<8x8xf32>
    %120 = vector.extract_strided_slice %112 {offsets = [0, 0], sizes = [8, 8], strides = [1, 1]} : vector<8x32xf32> to vector<8x8xf32>
    %cst_42 = arith.constant dense<0.000000e+00> : vector<8x8xf32>
    %121 = tpu.matmul %119, %120, %cst_42 {dimension_numbers = #tpu.dot_dimension_numbers<[1], [1], [0], [0], [0, 0, 1, 0], [], []>} : vector<8x8xf32>, vector<8x8xf32>, vector<8x8xf32> -> vector<8x8xf32>
    %122 = arith.addf %121, %117 : vector<8x8xf32>
    %cst_43 = arith.constant dense<0xFF800000> : vector<8xf32>
    %123 = vector.multi_reduction <maximumf>, %122, %cst_43 [1] : vector<8x8xf32> to vector<8xf32>
    %124 = vector.shape_cast %123 : vector<8xf32> to vector<8x1xf32>
    %125 = vector.broadcast %124 : vector<8x1xf32> to vector<8x8xf32>
    %126 = arith.subf %122, %125 : vector<8x8xf32>
    %127 = math.exp %126 : vector<8x8xf32>
    %cst_44 = arith.constant dense<0.000000e+00> : vector<8xf32>
    %128 = vector.multi_reduction <add>, %127, %cst_44 [1] : vector<8x8xf32> to vector<8xf32>
    %129 = vector.shape_cast %128 : vector<8xf32> to vector<8x1xf32>
    %130 = tpu.reciprocal %129 {approx = true} : vector<8x1xf32> -> vector<8x1xf32>
    %131 = arith.mulf %129, %130 : vector<8x1xf32>
    %cst_45 = arith.constant 2.000000e+00 : f32
    %132 = vector.broadcast %cst_45 : f32 to vector<8x1xf32>
    %133 = arith.subf %132, %131 : vector<8x1xf32>
    %134 = arith.mulf %130, %133 : vector<8x1xf32>
    %135 = vector.extract_strided_slice %113 {offsets = [0, 0], sizes = [8, 8], strides = [1, 1]} : vector<8x32xf32> to vector<8x8xf32>
    %cst_46 = arith.constant dense<0.000000e+00> : vector<8x8xf32>
    %136 = tpu.matmul %127, %135, %cst_46 {dimension_numbers = #tpu.dot_dimension_numbers<[1], [0], [0], [1], [0, 0, 1, 1], [], []>} : vector<8x8xf32>, vector<8x8xf32>, vector<8x8xf32> -> vector<8x8xf32>
    %137 = vector.broadcast %134 : vector<8x1xf32> to vector<8x8xf32>
    %138 = arith.mulf %136, %137 : vector<8x8xf32>
    %139 = vector.extract_strided_slice %1 {offsets = [0, 0], sizes = [8, 32], strides = [1, 1]} : vector<32x32xf32> to vector<8x32xf32>
    %cst_47 = arith.constant dense<0.000000e+00> : vector<8x32xf32>
    %140 = tpu.matmul %138, %139, %cst_47 {dimension_numbers = #tpu.dot_dimension_numbers<[1], [0], [0], [1], [0, 0, 1, 1], [], []>} : vector<8x8xf32>, vector<8x32xf32>, vector<8x32xf32> -> vector<8x32xf32>
    %141 = arith.addf %118, %140 : vector<8x32xf32>
    %142 = vector.extract_strided_slice %111 {offsets = [0, 8], sizes = [8, 8], strides = [1, 1]} : vector<8x32xf32> to vector<8x8xf32>
    %143 = vector.extract_strided_slice %112 {offsets = [0, 8], sizes = [8, 8], strides = [1, 1]} : vector<8x32xf32> to vector<8x8xf32>
    %cst_48 = arith.constant dense<0.000000e+00> : vector<8x8xf32>
    %144 = tpu.matmul %142, %143, %cst_48 {dimension_numbers = #tpu.dot_dimension_numbers<[1], [1], [0], [0], [0, 0, 1, 0], [], []>} : vector<8x8xf32>, vector<8x8xf32>, vector<8x8xf32> -> vector<8x8xf32>
    %145 = arith.addf %144, %117 : vector<8x8xf32>
    %cst_49 = arith.constant dense<0xFF800000> : vector<8xf32>
    %146 = vector.multi_reduction <maximumf>, %145, %cst_49 [1] : vector<8x8xf32> to vector<8xf32>
    %147 = vector.shape_cast %146 : vector<8xf32> to vector<8x1xf32>
    %148 = vector.broadcast %147 : vector<8x1xf32> to vector<8x8xf32>
    %149 = arith.subf %145, %148 : vector<8x8xf32>
    %150 = math.exp %149 : vector<8x8xf32>
    %cst_50 = arith.constant dense<0.000000e+00> : vector<8xf32>
    %151 = vector.multi_reduction <add>, %150, %cst_50 [1] : vector<8x8xf32> to vector<8xf32>
    %152 = vector.shape_cast %151 : vector<8xf32> to vector<8x1xf32>
    %153 = tpu.reciprocal %152 {approx = true} : vector<8x1xf32> -> vector<8x1xf32>
    %154 = arith.mulf %152, %153 : vector<8x1xf32>
    %cst_51 = arith.constant 2.000000e+00 : f32
    %155 = vector.broadcast %cst_51 : f32 to vector<8x1xf32>
    %156 = arith.subf %155, %154 : vector<8x1xf32>
    %157 = arith.mulf %153, %156 : vector<8x1xf32>
    %158 = vector.extract_strided_slice %113 {offsets = [0, 8], sizes = [8, 8], strides = [1, 1]} : vector<8x32xf32> to vector<8x8xf32>
    %cst_52 = arith.constant dense<0.000000e+00> : vector<8x8xf32>
    %159 = tpu.matmul %150, %158, %cst_52 {dimension_numbers = #tpu.dot_dimension_numbers<[1], [0], [0], [1], [0, 0, 1, 1], [], []>} : vector<8x8xf32>, vector<8x8xf32>, vector<8x8xf32> -> vector<8x8xf32>
    %160 = vector.broadcast %157 : vector<8x1xf32> to vector<8x8xf32>
    %161 = arith.mulf %159, %160 : vector<8x8xf32>
    %162 = vector.extract_strided_slice %1 {offsets = [8, 0], sizes = [8, 32], strides = [1, 1]} : vector<32x32xf32> to vector<8x32xf32>
    %cst_53 = arith.constant dense<0.000000e+00> : vector<8x32xf32>
    %163 = tpu.matmul %161, %162, %cst_53 {dimension_numbers = #tpu.dot_dimension_numbers<[1], [0], [0], [1], [0, 0, 1, 1], [], []>} : vector<8x8xf32>, vector<8x32xf32>, vector<8x32xf32> -> vector<8x32xf32>
    %164 = arith.addf %141, %163 : vector<8x32xf32>
    %165 = vector.extract_strided_slice %111 {offsets = [0, 16], sizes = [8, 8], strides = [1, 1]} : vector<8x32xf32> to vector<8x8xf32>
    %166 = vector.extract_strided_slice %112 {offsets = [0, 16], sizes = [8, 8], strides = [1, 1]} : vector<8x32xf32> to vector<8x8xf32>
    %cst_54 = arith.constant dense<0.000000e+00> : vector<8x8xf32>
    %167 = tpu.matmul %165, %166, %cst_54 {dimension_numbers = #tpu.dot_dimension_numbers<[1], [1], [0], [0], [0, 0, 1, 0], [], []>} : vector<8x8xf32>, vector<8x8xf32>, vector<8x8xf32> -> vector<8x8xf32>
    %168 = arith.addf %167, %117 : vector<8x8xf32>
    %cst_55 = arith.constant dense<0xFF800000> : vector<8xf32>
    %169 = vector.multi_reduction <maximumf>, %168, %cst_55 [1] : vector<8x8xf32> to vector<8xf32>
    %170 = vector.shape_cast %169 : vector<8xf32> to vector<8x1xf32>
    %171 = vector.broadcast %170 : vector<8x1xf32> to vector<8x8xf32>
    %172 = arith.subf %168, %171 : vector<8x8xf32>
    %173 = math.exp %172 : vector<8x8xf32>
    %cst_56 = arith.constant dense<0.000000e+00> : vector<8xf32>
    %174 = vector.multi_reduction <add>, %173, %cst_56 [1] : vector<8x8xf32> to vector<8xf32>
    %175 = vector.shape_cast %174 : vector<8xf32> to vector<8x1xf32>
    %176 = tpu.reciprocal %175 {approx = true} : vector<8x1xf32> -> vector<8x1xf32>
    %177 = arith.mulf %175, %176 : vector<8x1xf32>
    %cst_57 = arith.constant 2.000000e+00 : f32
    %178 = vector.broadcast %cst_57 : f32 to vector<8x1xf32>
    %179 = arith.subf %178, %177 : vector<8x1xf32>
    %180 = arith.mulf %176, %179 : vector<8x1xf32>
    %181 = vector.extract_strided_slice %113 {offsets = [0, 16], sizes = [8, 8], strides = [1, 1]} : vector<8x32xf32> to vector<8x8xf32>
    %cst_58 = arith.constant dense<0.000000e+00> : vector<8x8xf32>
    %182 = tpu.matmul %173, %181, %cst_58 {dimension_numbers = #tpu.dot_dimension_numbers<[1], [0], [0], [1], [0, 0, 1, 1], [], []>} : vector<8x8xf32>, vector<8x8xf32>, vector<8x8xf32> -> vector<8x8xf32>
    %183 = vector.broadcast %180 : vector<8x1xf32> to vector<8x8xf32>
    %184 = arith.mulf %182, %183 : vector<8x8xf32>
    %185 = vector.extract_strided_slice %1 {offsets = [16, 0], sizes = [8, 32], strides = [1, 1]} : vector<32x32xf32> to vector<8x32xf32>
    %cst_59 = arith.constant dense<0.000000e+00> : vector<8x32xf32>
    %186 = tpu.matmul %184, %185, %cst_59 {dimension_numbers = #tpu.dot_dimension_numbers<[1], [0], [0], [1], [0, 0, 1, 1], [], []>} : vector<8x8xf32>, vector<8x32xf32>, vector<8x32xf32> -> vector<8x32xf32>
    %187 = arith.addf %164, %186 : vector<8x32xf32>
    %188 = vector.extract_strided_slice %111 {offsets = [0, 24], sizes = [8, 8], strides = [1, 1]} : vector<8x32xf32> to vector<8x8xf32>
    %189 = vector.extract_strided_slice %112 {offsets = [0, 24], sizes = [8, 8], strides = [1, 1]} : vector<8x32xf32> to vector<8x8xf32>
    %cst_60 = arith.constant dense<0.000000e+00> : vector<8x8xf32>
    %190 = tpu.matmul %188, %189, %cst_60 {dimension_numbers = #tpu.dot_dimension_numbers<[1], [1], [0], [0], [0, 0, 1, 0], [], []>} : vector<8x8xf32>, vector<8x8xf32>, vector<8x8xf32> -> vector<8x8xf32>
    %191 = arith.addf %190, %117 : vector<8x8xf32>
    %cst_61 = arith.constant dense<0xFF800000> : vector<8xf32>
    %192 = vector.multi_reduction <maximumf>, %191, %cst_61 [1] : vector<8x8xf32> to vector<8xf32>
    %193 = vector.shape_cast %192 : vector<8xf32> to vector<8x1xf32>
    %194 = vector.broadcast %193 : vector<8x1xf32> to vector<8x8xf32>
    %195 = arith.subf %191, %194 : vector<8x8xf32>
    %196 = math.exp %195 : vector<8x8xf32>
    %cst_62 = arith.constant dense<0.000000e+00> : vector<8xf32>
    %197 = vector.multi_reduction <add>, %196, %cst_62 [1] : vector<8x8xf32> to vector<8xf32>
    %198 = vector.shape_cast %197 : vector<8xf32> to vector<8x1xf32>
    %199 = tpu.reciprocal %198 {approx = true} : vector<8x1xf32> -> vector<8x1xf32>
    %200 = arith.mulf %198, %199 : vector<8x1xf32>
    %cst_63 = arith.constant 2.000000e+00 : f32
    %201 = vector.broadcast %cst_63 : f32 to vector<8x1xf32>
    %202 = arith.subf %201, %200 : vector<8x1xf32>
    %203 = arith.mulf %199, %202 : vector<8x1xf32>
    %204 = vector.extract_strided_slice %113 {offsets = [0, 24], sizes = [8, 8], strides = [1, 1]} : vector<8x32xf32> to vector<8x8xf32>
    %cst_64 = arith.constant dense<0.000000e+00> : vector<8x8xf32>
    %205 = tpu.matmul %196, %204, %cst_64 {dimension_numbers = #tpu.dot_dimension_numbers<[1], [0], [0], [1], [0, 0, 1, 1], [], []>} : vector<8x8xf32>, vector<8x8xf32>, vector<8x8xf32> -> vector<8x8xf32>
    %206 = vector.broadcast %203 : vector<8x1xf32> to vector<8x8xf32>
    %207 = arith.mulf %205, %206 : vector<8x8xf32>
    %208 = vector.extract_strided_slice %1 {offsets = [24, 0], sizes = [8, 32], strides = [1, 1]} : vector<32x32xf32> to vector<8x32xf32>
    %cst_65 = arith.constant dense<0.000000e+00> : vector<8x32xf32>
    %209 = tpu.matmul %207, %208, %cst_65 {dimension_numbers = #tpu.dot_dimension_numbers<[1], [0], [0], [1], [0, 0, 1, 1], [], []>} : vector<8x8xf32>, vector<8x32xf32>, vector<8x32xf32> -> vector<8x32xf32>
    %210 = arith.addf %187, %209 : vector<8x32xf32>
    %211 = vector.broadcast %2 : vector<1x32xf32> to vector<8x32xf32>
    %212 = arith.addf %210, %211 : vector<8x32xf32>
    %c8 = arith.constant 8 : index
    %c0_66 = arith.constant 0 : index
    %213 = vector.load %arg7[%c8, %c0_66] : memref<16x32xf32, #tpu.memory_space<vmem>>, vector<8x32xf32>
    tpu.vector_store %arg7[%c8, %c0_66], %212 {strides = array<i32>} : memref<16x32xf32, #tpu.memory_space<vmem>>, vector<8x32xf32>,
    return
  }
  func.func @transform_0(%arg0: i32) -> (i32, i32) {
    %c0_i32 = arith.constant 0 : i32
    %c0_i32_0 = arith.constant 0 : i32
    return %arg0, %c0_i32 : i32, i32
  }
  func.func @transform_1(%arg0: i32) -> (i32, i32, i32) {
    %c0_i32 = arith.constant 0 : i32
    %c0_i32_0 = arith.constant 0 : i32
    %c0_i32_1 = arith.constant 0 : i32
    return %arg0, %c0_i32, %c0_i32_0 : i32, i32, i32
  }
  func.func @transform_2(%arg0: i32) -> (i32, i32) {
    %c0_i32 = arith.constant 0 : i32
    %c0_i32_0 = arith.constant 0 : i32
    %c0_i32_1 = arith.constant 0 : i32
    return %c0_i32, %c0_i32_0 : i32, i32
  }
  func.func @transform_3(%arg0: i32) -> (i32, i32) {
    %c0_i32 = arith.constant 0 : i32
    %c0_i32_0 = arith.constant 0 : i32
    %c0_i32_1 = arith.constant 0 : i32
    return %c0_i32, %c0_i32_0 : i32, i32
  }
  func.func @transform_4(%arg0: i32) -> (i32, i32) {
    %c0_i32 = arith.constant 0 : i32
    %c0_i32_0 = arith.constant 0 : i32
    %c0_i32_1 = arith.constant 0 : i32
    return %c0_i32, %c0_i32_0 : i32, i32
  }
  func.func @transform_5(%arg0: i32) -> (i32, i32) {
    %c0_i32 = arith.constant 0 : i32
    %c0_i32_0 = arith.constant 0 : i32
    %c0_i32_1 = arith.constant 0 : i32
    return %c0_i32, %c0_i32_0 : i32, i32
  }
  func.func @transform_6(%arg0: i32) -> (i32, i32) {
    %c0_i32 = arith.constant 0 : i32
    %c0_i32_0 = arith.constant 0 : i32
    return %arg0, %c0_i32 : i32, i32
  }
}

</mosaic_0001>

<bundles_post_ra>
// kernel: top_self_attention2.1
= control target key start
LH: loop header
LB: loop body
LE: loop exit
PB: predicated region body
PF: predicated region fallthrough
CT: control target
= control target key end

     0   :  { %vm41_vm0 = vcmask 261120   ;;  %v2360_v8 = vmov 0.0   ;;  %vm2361_vm1 = vmmov 0   ;;  %s2363_s10 = smov 96   ;;  %s2364_s11 = smov 88   ;;  %vm133_vm2 = vcmask 64512   ;;  %s2665_s2 = inlined_call_operand.vmem [shape: f32[32,96], index: 2, kind: input, shape index: {}]   ;;  %s2666_s0 = inlined_call_operand.vmem [shape: f32[16,32], index: 0, kind: input, shape index: {}]   ;;  %s2667_s3 = inlined_call_operand.vmem [shape: f32[1,96], index: 3, kind: input, shape index: {}]   ;;  %s2668_s1 = inlined_call_operand.vmem [shape: f32[2,1,8], index: 1, kind: input, shape index: {}]   ;;  %s2669_s4 = inlined_call_operand.vmem [shape: f32[32,32], index: 4, kind: input, shape index: {}]   ;;  %s2670_s5 = inlined_call_operand.vmem [shape: f32[1,32], index: 5, kind: input, shape index: {}]   ;;  %s2671_s6 = inlined_call_operand.vmem [shape: f32[16,32], index: 6, kind: output, shape index: {}]  }
   0x1   :  { %v23_v0 = vld [vmem:[%s2665_s2] sm:$0xff]  ;;  %v24_v1 = vld [vmem:[%s2665_s2 + $0x8] sm:$0xff]  ;;  %v25_v2 = vld [vmem:[%s2665_s2 + $0x10] sm:$0xff]  ;;  %2187 = vmatprep.subr.mxu1 %v2360_v8  ;;  %2189 = vmatprep.mubr.msk.f32.mxu1 %vm2361_vm1, %v2360_v8  ;;  %s2365_s13 = smov 56   ;;  %s2366_s14 = smov 64  }
   0x2   :  { %v2307_v3 = vpack.c.bf16 %v24_v1, %v23_v0  ;;  %v26_v4 = vld [vmem:[%s2665_s2 + $0x18] sm:$0xff]  ;;  %v32_v5 = vld [vmem:[%s2666_s0] sm:$0xff]  ;;  %v33_v7 = vld [vmem:[%s2666_s0 + $0x8] sm:$0xff]  ;;  %s2362_s0 = smov 120   ;;  %s2367_s15 = smov 80  }
   0x3   :  { %v2311_v6 = vpack.c.bf16 %v26_v4, %v25_v2  ;;  %2184 = vmatprep.mubr.msk.f32.mxu0 %vm41_vm0, %v32_v5  ;;  %v2083_v9 = vld [vmem:[%s2667_s3] ss:$0 sm:$0xff]  ;;  %s2368_s16 = smov 112   ;;  %s2369_s17 = smov 48   ;;  %v2492_v38 = vld [vmem:[%s2669_s4 + $0x8] sm:$0xff] }
   0x4   :  { %2308 = vmatprep.subr.bf16.mxu0 %v2307_v3  ;;  %v2461_v17 = vld [vmem:[%s2668_s1] ss:$0 sm:$0xff]  ;;  %s2370_s18 = smov 72   ;;  %s2371_s23 = smov 104  }
   0x5   :  { %2310 = vmatpush3.bf16.msra.mxu0 %v2307_v3  ;;  %v2498_v39 = vld [vmem:[%s2669_s4] sm:$0xff]  ;;  %s2372_s26 = smov 40  }
   0x6   :  { %2312 = vmatprep.subr.bf16.mxu0 %v2311_v6 }
   0x9   :  { %2314 = vmatpush3.bf16.msra.mxu0 %v2311_v6 }
   0xa   :  { %2197 = vmatprep.subr.mxu0 %v2360_v8 }
   0xc   :  { %2185 = vmatmul.mubr.msk.f32.vlgmr.msra.gmra.mrb[0].mxu0 %vm41_vm0, %v33_v7 }
   0xd   :  { %2199 = vmatprep.mubr.msk.f32.mxu0 %vm2361_vm1, %v2360_v8 }
  0xdf   :  { %v2186_v10 = vpop.f32.mrb[0].mxu0 }
  0xe0   :  { %v2437_v11 = vadd.f32 %v2186_v10, %v2083_v9  ;;  %v114_v12 = vpop.f32.mrb[1].mxu0 }
  0xe1   :  { %v2439_v13 = vadd.f32 %v2083_v9, %v114_v12 }
  0xe3   :  { %298 = vrot.lane.b32.xlu1 %v2439_v13, %s2362_s0  ;;  %131 = vrot.lane.b32.xlu0 %v2439_v13, %s2363_s10 }
  0xe7   :  { %300 = vrot.lane.b32.xlu0 %v2439_v13, %s2364_s11 }
 0x155   :  { %v132_v14 = vpop.permute.xlu0 %131  ;;  %v299_v16 = vpop.permute.xlu1 %298 }
 0x156   :  { %2188 = vmatpush3.xpose.msk.msra.mxu1 %vm133_vm2, %v132_v14  ;;  %v2537_v14 = vld [vmem:[%s2669_s4 + $0x10] sm:$0xff] }
 0x157   :  { %2192 = vmatprep.subr.mxu1 %v2360_v8 }
 0x159   :  { %2190 = vmatmul.mubr.msk.f32.vlgmr.msra.gmra.mrb[0].mxu1 %vm133_vm2, %v2439_v13  ;;  %v301_v15 = vpop.permute.xlu0 %300 }
 0x15a   :  { %2198 = vmatpush3.xpose.msk.msra.mxu0 %vm133_vm2, %v301_v15  ;;  %2194 = vmatprep.mubr.msk.f32.mxu1 %vm2361_vm1, %v2360_v8 }
 0x15b   :  { %2207 = vmatprep.subr.mxu0 %v2360_v8 }
 0x15d   :  { %2200 = vmatmul.mubr.msk.f32.vlgmr.msra.gmra.mrb[2].mxu0 %vm133_vm2, %v299_v16 }
 0x15e   :  { %2209 = vmatprep.mubr.msk.f32.mxu0 %vm2361_vm1, %v2360_v8  ;;  %2208 = vmatpush3.msra.mxu0 %v2492_v38 }
 0x15f   :  { %2217 = vmatprep.subr.mxu0 %v2360_v8 }
 0x22c   :  { %v204_v18 = vpop.f32.mrb[0].mxu1 }
 0x22d   :  { %v205_v19 = vadd.f32 %v2461_v17, %v204_v18  ;;  %v2191_v20 = vpop.f32.mrb[1].mxu1 }
 0x22f   :  { %v208_v21 = vsel %vm133_vm2, %v205_v19, -inf }
 0x230   :  { %209 = vmax.xlane.f32.xlu1 %v208_v21  ;;  %v372_v22 = vpop.f32.mrb[2].mxu0 }
 0x231   :  { %v373_v23 = vadd.f32 %v2461_v17, %v372_v22  ;;  %v2201_v24 = vpop.f32.mrb[3].mxu0 }
 0x233   :  { %v376_v25 = vsel %vm133_vm2, %v373_v23, -inf }
 0x234   :  { %377 = vmax.xlane.f32.xlu0 %v376_v25 }
 0x241   :  { %389 = vrot.lane.b32.xlu1 %v2439_v13, %s2365_s13 }
 0x24a   :  { %221 = vrot.lane.b32.xlu0 %v2439_v13, %s2366_s14 }
 0x24e   :  { %614 = vrot.lane.b32.xlu0 %v2439_v13, %s2367_s15 }
 0x252   :  { %612 = vrot.lane.b32.xlu0 %v2439_v13, %s2368_s16 }
 0x2bd   :  { %v210_v26 = vpop.xlane.xlu1 %209 }
 0x2be   :  { %v211_v27 = vsub.f32 %v205_v19, %v210_v26 }
 0x2c0   :  { %v212_v28 = vmul.f32 1.442695, %v211_v27 }
 0x2c1   :  { %v378_v29 = vpop.xlane.xlu0 %377  ;;  %v390_v34 = vpop.permute.xlu1 %389 }
 0x2c2   :  { %2328 = vpow2.f32 %v212_v28  ;;  %v379_v30 = vsub.f32 %v373_v23, %v378_v29 }
 0x2c4   :  { %v380_v31 = vmul.f32 1.442695, %v379_v30 }
 0x2c5   :  { %v222_v32 = vpop.permute.xlu0 %221 }
 0x2c6   :  { %2330 = vpow2.f32 %v380_v31  ;;  %2193 = vmatpush3.msra.mxu1 %v222_v32 }
 0x2c7   :  { %2202 = vmatprep.subr.mxu1 %v2360_v8 }
 0x2c9   :  { %v615_v40 = vpop.permute.xlu0 %614 }
 0x2cc   :  { %v2329_v33 = vpop.eup %2328 }
 0x2cd   :  { %2195 = vmatmul.mubr.msk.f32.vlgmr.msra.gmra.mrb[2].mxu1 %vm133_vm2, %v2329_v33  ;;  %v214_v35 = vsel %vm133_vm2, %v2329_v33, 0.0  ;;  %v613_v41 = vpop.permute.xlu0 %612 }
 0x2ce   :  { %2203 = vmatpush3.msra.mxu1 %v390_v34  ;;  %215 = vadd.xlane.f32.xlu0 %v214_v35 }
 0x2cf   :  { %2204 = vmatprep.mubr.msk.f32.mxu1 %vm2361_vm1, %v2360_v8  ;;  %2212 = vmatprep.subr.mxu1 %v2360_v8 }
 0x2d0   :  { %v2331_v36 = vpop.eup %2330 }
 0x2d1   :  { %2205 = vmatmul.mubr.msk.f32.vlgmr.msra.gmra.mrb[4].mxu1 %vm133_vm2, %v2331_v36  ;;  %v382_v37 = vsel %vm133_vm2, %v2331_v36, 0.0 }
 0x2d2   :  { %383 = vadd.xlane.f32.xlu1 %v382_v37  ;;  %2214 = vmatprep.mubr.msk.f32.mxu1 %vm2361_vm1, %v2360_v8 }
 0x2d3   :  { %2213 = vmatpush3.msra.mxu1 %v2498_v39 }
 0x2d4   :  { %2222 = vmatprep.subr.mxu1 %v2360_v8 }
 0x2e3   :  { %703 = vrot.lane.b32.xlu1 %v2439_v13, %s2369_s17 }
 0x2e4   :  { %856 = vrot.lane.b32.xlu0 %v2439_v13, %s2370_s18 }
 0x35b   :  { %v216_v42 = vpop.xlane.xlu0 %215 }
 0x35c   :  { %2332 = vrcp.f32 %v216_v42 }
 0x35f   :  { %v384_v43 = vpop.xlane.xlu1 %383  ;;  %v857_v9 = vpop.permute.xlu0 %856 }
 0x360   :  { %2334 = vrcp.f32 %v384_v43 }
 0x363   :  { %v704_v54 = vpop.permute.xlu1 %703 }
 0x366   :  { %v2333_v44 = vpop.eup %2332 }
 0x367   :  { %v218_v45 = vmul.f32 %v2333_v44, %v216_v42 }
 0x369   :  { %v219_v47 = vsub.f32 2.0, %v218_v45 }
 0x36a   :  { %v2335_v46 = vpop.eup %2334 }
 0x36b   :  { %v386_v48 = vmul.f32 %v2335_v46, %v384_v43  ;;  %v220_v50 = vmul.f32 %v2333_v44, %v219_v47 }
 0x36d   :  { %v387_v49 = vsub.f32 2.0, %v386_v48  ;;  %v2581_v48 = vld [vmem:[%s2668_s1 + $0x1] ss:$0 sm:$0xff] }
 0x36f   :  { %v388_v55 = vmul.f32 %v2335_v46, %v387_v49 }
 0x3a0   :  { %v293_v51 = vpop.f32.mrb[2].mxu1 }
 0x3a1   :  { %v297_v52 = vmul.f32 %v293_v51, %v220_v50  ;;  %v2196_v53 = vpop.f32.mrb[3].mxu1 }
 0x3a3   :  { %2215 = vmatmul.mubr.msk.f32.vlgmr.msra.gmra.mrb[6].mxu1 %vm133_vm2, %v297_v52 }
 0x3a4   :  { %2223 = vmatpush3.msra.mxu1 %v704_v54  ;;  %v461_v56 = vpop.f32.mrb[4].mxu1  ;;  %2224 = vmatprep.mubr.msk.f32.mxu1 %vm2361_vm1, %v2360_v8 }
 0x3a5   :  { %v465_v57 = vmul.f32 %v461_v56, %v388_v55  ;;  %v2206_v58 = vpop.f32.mrb[5].mxu1  ;;  %2232 = vmatprep.subr.mxu1 %v2360_v8 }
 0x3a7   :  { %2210 = vmatmul.mubr.msk.f32.vlgmr.msra.gmra.mrb[4].mxu0 %vm133_vm2, %v465_v57 }
 0x3a8   :  { %2218 = vmatpush3.xpose.msk.msra.mxu0 %vm133_vm2, %v615_v40  ;;  %2219 = vmatprep.mubr.msk.f32.mxu0 %vm2361_vm1, %v2360_v8  ;;  %v2574_v40 = vld [vmem:[%s2669_s4 + $0x18] sm:$0xff] }
 0x3a9   :  { %2227 = vmatprep.subr.mxu0 %v2360_v8 }
 0x3ab   :  { %2220 = vmatmul.mubr.msk.f32.vlgmr.msra.gmra.mrb[6].mxu0 %vm133_vm2, %v613_v41 }
 0x3ac   :  { %2229 = vmatprep.mubr.msk.f32.mxu0 %vm2361_vm1, %v2360_v8  ;;  %2228 = vmatpush3.msra.mxu0 %v2537_v14 }
 0x3ad   :  { %2237 = vmatprep.subr.mxu0 %v2360_v8 }
 0x476   :  { %v608_v59 = vpop.f32.mrb[6].mxu1 }
 0x477   :  { %v2216_v60 = vpop.f32.mrb[7].mxu1 }
 0x47a   :  { %v535_v61 = vpop.f32.mrb[4].mxu0 }
 0x47b   :  { %v2515_v62 = vadd.f32 %v608_v59, %v535_v61  ;;  %v2211_v63 = vpop.f32.mrb[5].mxu0 }
 0x47e   :  { %v686_v0 = vpop.f32.mrb[6].mxu0 }
 0x47f   :  { %v687_v1 = vadd.f32 %v2461_v17, %v686_v0  ;;  %v2221_v2 = vpop.f32.mrb[7].mxu0 }
 0x481   :  { %v690_v3 = vsel %vm133_vm2, %v687_v1, -inf }
 0x482   :  { %691 = vmax.xlane.f32.xlu1 %v690_v3 }
 0x493   :  { %854 = vrot.lane.b32.xlu1 %v2439_v13, %s2371_s23 }
 0x50f   :  { %v692_v4 = vpop.xlane.xlu1 %691 }
 0x510   :  { %v693_v5 = vsub.f32 %v687_v1, %v692_v4 }
 0x512   :  { %v694_v6 = vmul.f32 1.442695, %v693_v5  ;;  %v2615_v5 = vld [vmem:[%s2670_s5] ss:$0 sm:$0xff] }
 0x513   :  { %v855_v12 = vpop.permute.xlu1 %854 }
 0x514   :  { %2336 = vpow2.f32 %v694_v6 }
 0x51e   :  { %v2337_v7 = vpop.eup %2336 }
 0x51f   :  { %2225 = vmatmul.mubr.msk.f32.vlgmr.msra.gmra.mrb[8].mxu1 %vm133_vm2, %v2337_v7  ;;  %v696_v10 = vsel %vm133_vm2, %v2337_v7, 0.0 }
 0x520   :  { %2233 = vmatpush3.xpose.msk.msra.mxu1 %vm133_vm2, %v857_v9  ;;  %697 = vadd.xlane.f32.xlu1 %v696_v10 }
 0x521   :  { %2234 = vmatprep.mubr.msk.f32.mxu1 %vm2361_vm1, %v2360_v8  ;;  %2242 = vmatprep.subr.mxu1 %v2360_v8 }
 0x523   :  { %2235 = vmatmul.mubr.msk.f32.vlgmr.msra.gmra.mrb[10].mxu1 %vm133_vm2, %v855_v12 }
 0x524   :  { %2244 = vmatprep.mubr.msk.f32.mxu1 %vm2361_vm1, %v2360_v8  ;;  %2243 = vmatpush3.msra.mxu1 %v2574_v40 }
 0x525   :  { %2252 = vmatprep.subr.mxu1 %v2360_v8 }
 0x531   :  { %1113 = vrot.lane.b32.xlu1 %v2437_v11, %s2363_s10 }
 0x535   :  { %1281 = vrot.lane.b32.xlu1 %v2437_v11, %s2364_s11 }
 0x5ad   :  { %v698_v15 = vpop.xlane.xlu1 %697 }
 0x5ae   :  { %2338 = vrcp.f32 %v698_v15 }
 0x5b8   :  { %v2339_v16 = vpop.eup %2338 }
 0x5b9   :  { %v700_v18 = vmul.f32 %v2339_v16, %v698_v15 }
 0x5bb   :  { %v701_v19 = vsub.f32 2.0, %v700_v18 }
 0x5bd   :  { %v702_v20 = vmul.f32 %v2339_v16, %v701_v19 }
 0x5f2   :  { %v775_v21 = vpop.f32.mrb[8].mxu1 }
 0x5f3   :  { %v779_v22 = vmul.f32 %v775_v21, %v702_v20  ;;  %v2226_v23 = vpop.f32.mrb[9].mxu1 }
 0x5f5   :  { %2230 = vmatmul.mubr.msk.f32.vlgmr.msra.gmra.mrb[8].mxu0 %vm133_vm2, %v779_v22 }
 0x5f6   :  { %v928_v24 = vpop.f32.mrb[10].mxu1  ;;  %2239 = vmatprep.mubr.msk.f32.mxu0 %vm2361_vm1, %v2360_v8 }
 0x5f7   :  { %v929_v25 = vadd.f32 %v2461_v17, %v928_v24  ;;  %v2236_v26 = vpop.f32.mrb[11].mxu1  ;;  %v1114_v17 = vpop.permute.xlu1 %1113 }
 0x5f9   :  { %v932_v27 = vsel %vm133_vm2, %v929_v25, -inf }
 0x5fa   :  { %933 = vmax.xlane.f32.xlu0 %v932_v27 }
 0x610   :  { %945 = vrot.lane.b32.xlu0 %v2439_v13, %s2372_s26  ;;  %v1282_v13 = vpop.permute.xlu1 %1281 }
 0x614   :  { %1279 = vrot.lane.b32.xlu0 %v2437_v11, %s2362_s0 }
 0x687   :  { %v934_v28 = vpop.xlane.xlu0 %933 }
 0x688   :  { %v935_v29 = vsub.f32 %v929_v25, %v934_v28 }
 0x68a   :  { %v936_v30 = vmul.f32 1.442695, %v935_v29 }
 0x68b   :  { %v946_v31 = vpop.permute.xlu0 %945 }
 0x68c   :  { %2340 = vpow2.f32 %v936_v30  ;;  %2238 = vmatpush3.msra.mxu0 %v946_v31 }
 0x68d   :  { %2247 = vmatprep.subr.mxu0 %v2360_v8 }
 0x68f   :  { %v1280_v34 = vpop.permute.xlu0 %1279 }
 0x696   :  { %v2341_v32 = vpop.eup %2340 }
 0x697   :  { %2240 = vmatmul.mubr.msk.f32.vlgmr.msra.gmra.mrb[10].mxu0 %vm133_vm2, %v2341_v32  ;;  %v938_v33 = vsel %vm133_vm2, %v2341_v32, 0.0 }
 0x698   :  { %2248 = vmatpush3.xpose.msk.msra.mxu0 %vm133_vm2, %v1114_v17  ;;  %939 = vadd.xlane.f32.xlu1 %v938_v33 }
 0x699   :  { %2249 = vmatprep.mubr.msk.f32.mxu0 %vm2361_vm1, %v2360_v8  ;;  %2257 = vmatprep.subr.mxu0 %v2360_v8 }
 0x69b   :  { %2250 = vmatmul.mubr.msk.f32.vlgmr.msra.gmra.mrb[12].mxu0 %vm133_vm2, %v2437_v11 }
 0x69c   :  { %2258 = vmatpush3.xpose.msk.msra.mxu0 %vm133_vm2, %v1282_v13  ;;  %2259 = vmatprep.mubr.msk.f32.mxu0 %vm2361_vm1, %v2360_v8 }
 0x69d   :  { %2267 = vmatprep.subr.mxu0 %v2360_v8 }
 0x69f   :  { %2260 = vmatmul.mubr.msk.f32.vlgmr.msra.gmra.mrb[14].mxu0 %vm133_vm2, %v1280_v34 }
 0x6a0   :  { %2268 = vmatpush3.msra.mxu0 %v2492_v38  ;;  %2269 = vmatprep.mubr.msk.f32.mxu0 %vm2361_vm1, %v2360_v8 }
 0x6a1   :  { %2277 = vmatprep.subr.mxu0 %v2360_v8 }
 0x6a9   :  { %1202 = vrot.lane.b32.xlu1 %v2437_v11, %s2366_s14 }
 0x6c8   :  { %v849_v35 = vpop.f32.mrb[8].mxu0 }
 0x6c9   :  { %v853_v36 = vadd.f32 %v849_v35, %v2515_v62  ;;  %v2231_v37 = vpop.f32.mrb[9].mxu0 }
 0x725   :  { %v940_v38 = vpop.xlane.xlu1 %939 }
 0x726   :  { %2342 = vrcp.f32 %v940_v38 }
 0x729   :  { %v1203_v49 = vpop.permute.xlu1 %1202 }
 0x730   :  { %v2343_v41 = vpop.eup %2342 }
 0x731   :  { %v942_v42 = vmul.f32 %v2343_v41, %v940_v38 }
 0x733   :  { %v943_v43 = vsub.f32 2.0, %v942_v42 }
 0x735   :  { %v944_v44 = vmul.f32 %v2343_v41, %v943_v43 }
 0x76a   :  { %v1017_v45 = vpop.f32.mrb[10].mxu0 }
 0x76b   :  { %v1021_v46 = vmul.f32 %v1017_v45, %v944_v44  ;;  %v2241_v47 = vpop.f32.mrb[11].mxu0 }
 0x76d   :  { %2245 = vmatmul.mubr.msk.f32.vlgmr.msra.gmra.mrb[12].mxu1 %vm133_vm2, %v1021_v46 }
 0x76e   :  { %2253 = vmatpush3.msra.mxu1 %v1203_v49  ;;  %v1185_v50 = vpop.f32.mrb[12].mxu0  ;;  %2254 = vmatprep.mubr.msk.f32.mxu1 %vm2361_vm1, %v2360_v8 }
 0x76f   :  { %v1186_v51 = vadd.f32 %v2581_v48, %v1185_v50  ;;  %v2251_v52 = vpop.f32.mrb[13].mxu0  ;;  %2262 = vmatprep.subr.mxu1 %v2360_v8 }
 0x771   :  { %v1189_v53 = vsel %vm133_vm2, %v1186_v51, -inf }
 0x772   :  { %1190 = vmax.xlane.f32.xlu0 %v1189_v53  ;;  %v1353_v54 = vpop.f32.mrb[14].mxu0 }
 0x773   :  { %v1354_v55 = vadd.f32 %v2581_v48, %v1353_v54  ;;  %v2261_v56 = vpop.f32.mrb[15].mxu0 }
 0x775   :  { %v1357_v57 = vsel %vm133_vm2, %v1354_v55, -inf }
 0x776   :  { %1358 = vmax.xlane.f32.xlu0 %v1357_v57 }
 0x78c   :  { %1370 = vrot.lane.b32.xlu0 %v2437_v11, %s2365_s13 }
 0x790   :  { %1595 = vrot.lane.b32.xlu0 %v2437_v11, %s2367_s15 }
 0x794   :  { %1593 = vrot.lane.b32.xlu0 %v2437_v11, %s2368_s16 }
 0x7ff   :  { %v1191_v58 = vpop.xlane.xlu0 %1190 }
 0x800   :  { %v1192_v59 = vsub.f32 %v1186_v51, %v1191_v58 }
 0x802   :  { %v1193_v60 = vmul.f32 1.442695, %v1192_v59 }
 0x803   :  { %v1359_v61 = vpop.xlane.xlu0 %1358 }
 0x804   :  { %2344 = vpow2.f32 %v1193_v60  ;;  %v1360_v62 = vsub.f32 %v1354_v55, %v1359_v61 }
 0x806   :  { %v1361_v63 = vmul.f32 1.442695, %v1360_v62 }
 0x807   :  { %v1371_v1 = vpop.permute.xlu0 %1370 }
 0x808   :  { %2346 = vpow2.f32 %v1361_v63 }
 0x80b   :  { %v1596_v10 = vpop.permute.xlu0 %1595 }
 0x80e   :  { %v2345_v0 = vpop.eup %2344 }
 0x80f   :  { %2255 = vmatmul.mubr.msk.f32.vlgmr.msra.gmra.mrb[14].mxu1 %vm133_vm2, %v2345_v0  ;;  %v1195_v2 = vsel %vm133_vm2, %v2345_v0, 0.0  ;;  %v1594_v12 = vpop.permute.xlu0 %1593 }
 0x810   :  { %2263 = vmatpush3.msra.mxu1 %v1371_v1  ;;  %1196 = vadd.xlane.f32.xlu0 %v1195_v2 }
 0x811   :  { %2264 = vmatprep.mubr.msk.f32.mxu1 %vm2361_vm1, %v2360_v8  ;;  %2272 = vmatprep.subr.mxu1 %v2360_v8 }
 0x812   :  { %v2347_v3 = vpop.eup %2346 }
 0x813   :  { %2265 = vmatmul.mubr.msk.f32.vlgmr.msra.gmra.mrb[16].mxu1 %vm133_vm2, %v2347_v3  ;;  %v1363_v4 = vsel %vm133_vm2, %v2347_v3, 0.0 }
 0x814   :  { %1364 = vadd.xlane.f32.xlu1 %v1363_v4  ;;  %2273 = vmatpush3.msra.mxu1 %v2498_v39 }
 0x815   :  { %2274 = vmatprep.mubr.msk.f32.mxu1 %vm2361_vm1, %v2360_v8  ;;  %2282 = vmatprep.subr.mxu1 %v2360_v8 }
 0x825   :  { %1684 = vrot.lane.b32.xlu1 %v2437_v11, %s2369_s17 }
 0x826   :  { %1837 = vrot.lane.b32.xlu0 %v2437_v11, %s2370_s18 }
 0x840   :  { %v1091_v6 = vpop.f32.mrb[12].mxu1 }
 0x841   :  { %v1095_v7 = vadd.f32 %v1091_v6, %v853_v36  ;;  %v2246_v9 = vpop.f32.mrb[13].mxu1 }
 0x843   :  { %v1102_v39 = vadd.f32 %v2615_v5, %v1095_v7 }
 0x845   :  { %1103 = vst.msk [vmem:[%s2671_s6] sm:$0xff] %vm41_vm0, %v1102_v39 }
 0x89d   :  { %v1197_v15 = vpop.xlane.xlu0 %1196 }
 0x89e   :  { %2348 = vrcp.f32 %v1197_v15 }
 0x8a1   :  { %v1365_v16 = vpop.xlane.xlu1 %1364  ;;  %v1838_v45 = vpop.permute.xlu0 %1837 }
 0x8a2   :  { %2350 = vrcp.f32 %v1365_v16 }
 0x8a5   :  { %v1685_v28 = vpop.permute.xlu1 %1684 }
 0x8a8   :  { %v2349_v18 = vpop.eup %2348 }
 0x8a9   :  { %v1199_v19 = vmul.f32 %v2349_v18, %v1197_v15 }
 0x8ab   :  { %v1200_v21 = vsub.f32 2.0, %v1199_v19 }
 0x8ac   :  { %v2351_v20 = vpop.eup %2350 }
 0x8ad   :  { %v1367_v22 = vmul.f32 %v2351_v20, %v1365_v16  ;;  %v1201_v24 = vmul.f32 %v2349_v18, %v1200_v21 }
 0x8af   :  { %v1368_v23 = vsub.f32 2.0, %v1367_v22 }
 0x8b1   :  { %v1369_v29 = vmul.f32 %v2351_v20, %v1368_v23 }
 0x8e2   :  { %v1274_v25 = vpop.f32.mrb[14].mxu1 }
 0x8e3   :  { %v1278_v26 = vmul.f32 %v1274_v25, %v1201_v24  ;;  %v2256_v27 = vpop.f32.mrb[15].mxu1 }
 0x8e5   :  { %2275 = vmatmul.mubr.msk.f32.vlgmr.msra.gmra.mrb[18].mxu1 %vm133_vm2, %v1278_v26 }
 0x8e6   :  { %2283 = vmatpush3.msra.mxu1 %v1685_v28  ;;  %v1442_v30 = vpop.f32.mrb[16].mxu1  ;;  %2284 = vmatprep.mubr.msk.f32.mxu1 %vm2361_vm1, %v2360_v8 }
 0x8e7   :  { %v1446_v31 = vmul.f32 %v1442_v30, %v1369_v29  ;;  %v2266_v17 = vpop.f32.mrb[17].mxu1  ;;  %2292 = vmatprep.subr.mxu1 %v2360_v8 }
 0x8e9   :  { %2270 = vmatmul.mubr.msk.f32.vlgmr.msra.gmra.mrb[16].mxu0 %vm133_vm2, %v1446_v31 }
 0x8ea   :  { %2278 = vmatpush3.xpose.msk.msra.mxu0 %vm133_vm2, %v1596_v10  ;;  %2279 = vmatprep.mubr.msk.f32.mxu0 %vm2361_vm1, %v2360_v8 }
 0x8eb   :  { %2287 = vmatprep.subr.mxu0 %v2360_v8 }
 0x8ed   :  { %2280 = vmatmul.mubr.msk.f32.vlgmr.msra.gmra.mrb[18].mxu0 %vm133_vm2, %v1594_v12 }
 0x8ee   :  { %2288 = vmatpush3.msra.mxu0 %v2537_v14  ;;  %2289 = vmatprep.mubr.msk.f32.mxu0 %vm2361_vm1, %v2360_v8 }
 0x8ef   :  { %2297 = vmatprep.subr.mxu0 %v2360_v8 }
 0x9b8   :  { %v1589_v32 = vpop.f32.mrb[18].mxu1 }
 0x9b9   :  { %v2276_v33 = vpop.f32.mrb[19].mxu1 }
 0x9bc   :  { %v1516_v13 = vpop.f32.mrb[16].mxu0 }
 0x9bd   :  { %v1590_v34 = vadd.f32 %v1589_v32, %v1516_v13  ;;  %v2271_v35 = vpop.f32.mrb[17].mxu0 }
 0x9c0   :  { %v1667_v36 = vpop.f32.mrb[18].mxu0 }
 0x9c1   :  { %v1668_v37 = vadd.f32 %v2581_v48, %v1667_v36  ;;  %v2281_v38 = vpop.f32.mrb[19].mxu0 }
 0x9c3   :  { %v1671_v41 = vsel %vm133_vm2, %v1668_v37, -inf }
 0x9c4   :  { %1672 = vmax.xlane.f32.xlu1 %v1671_v41 }
 0x9d5   :  { %1835 = vrot.lane.b32.xlu1 %v2437_v11, %s2371_s23 }
 0xa51   :  { %v1673_v14 = vpop.xlane.xlu1 %1672 }
 0xa52   :  { %v1674_v42 = vsub.f32 %v1668_v37, %v1673_v14 }
 0xa54   :  { %v1675_v43 = vmul.f32 1.442695, %v1674_v42 }
 0xa55   :  { %v1836_v47 = vpop.permute.xlu1 %1835 }
 0xa56   :  { %2352 = vpow2.f32 %v1675_v43 }
 0xa60   :  { %v2353_v44 = vpop.eup %2352 }
 0xa61   :  { %2285 = vmatmul.mubr.msk.f32.vlgmr.msra.gmra.mrb[20].mxu1 %vm133_vm2, %v2353_v44  ;;  %v1677_v46 = vsel %vm133_vm2, %v2353_v44, 0.0 }
 0xa62   :  { %2293 = vmatpush3.xpose.msk.msra.mxu1 %vm133_vm2, %v1838_v45  ;;  %1678 = vadd.xlane.f32.xlu1 %v1677_v46 }
 0xa63   :  { %2294 = vmatprep.mubr.msk.f32.mxu1 %vm2361_vm1, %v2360_v8  ;;  %2302 = vmatprep.subr.mxu1 %v2360_v8 }
 0xa65   :  { %2295 = vmatmul.mubr.msk.f32.vlgmr.msra.gmra.mrb[22].mxu1 %vm133_vm2, %v1836_v47 }
 0xa66   :  { %2303 = vmatpush3.msra.mxu1 %v2574_v40  ;;  %2304 = vmatprep.mubr.msk.f32.mxu1 %vm2361_vm1, %v2360_v8 }
 0xa73   :  { %1926 = vrot.lane.b32.xlu1 %v2437_v11, %s2372_s26 }
 0xaef   :  { %v1679_v49 = vpop.xlane.xlu1 %1678 }
 0xaf0   :  { %2354 = vrcp.f32 %v1679_v49 }
 0xaf3   :  { %v1927_v57 = vpop.permute.xlu1 %1926 }
 0xafa   :  { %v2355_v50 = vpop.eup %2354 }
 0xafb   :  { %v1681_v51 = vmul.f32 %v2355_v50, %v1679_v49 }
 0xafd   :  { %v1682_v52 = vsub.f32 2.0, %v1681_v51 }
 0xaff   :  { %v1683_v53 = vmul.f32 %v2355_v50, %v1682_v52 }
 0xb34   :  { %v1756_v54 = vpop.f32.mrb[20].mxu1 }
 0xb35   :  { %v1760_v55 = vmul.f32 %v1756_v54, %v1683_v53  ;;  %v2286_v56 = vpop.f32.mrb[21].mxu1 }
 0xb37   :  { %2290 = vmatmul.mubr.msk.f32.vlgmr.msra.gmra.mrb[20].mxu0 %vm133_vm2, %v1760_v55 }
 0xb38   :  { %2298 = vmatpush3.msra.mxu0 %v1927_v57  ;;  %v1909_v40 = vpop.f32.mrb[22].mxu1  ;;  %2299 = vmatprep.mubr.msk.f32.mxu0 %vm2361_vm1, %v2360_v8 }
 0xb39   :  { %v1910_v58 = vadd.f32 %v2581_v48, %v1909_v40  ;;  %v2296_v11 = vpop.f32.mrb[23].mxu1 }
 0xb3b   :  { %v1913_v59 = vsel %vm133_vm2, %v1910_v58, -inf }
 0xb3c   :  { %1914 = vmax.xlane.f32.xlu0 %v1913_v59 }
 0xbc9   :  { %v1915_v60 = vpop.xlane.xlu0 %1914 }
 0xbca   :  { %v1916_v61 = vsub.f32 %v1910_v58, %v1915_v60 }
 0xbcc   :  { %v1917_v62 = vmul.f32 1.442695, %v1916_v61 }
 0xbce   :  { %2356 = vpow2.f32 %v1917_v62 }
 0xbd8   :  { %v2357_v63 = vpop.eup %2356 }
 0xbd9   :  { %2300 = vmatmul.mubr.msk.f32.vlgmr.msra.gmra.mrb[22].mxu0 %vm133_vm2, %v2357_v63  ;;  %v1919_v0 = vsel %vm133_vm2, %v2357_v63, 0.0 }
 0xbda   :  { %1920 = vadd.xlane.f32.xlu0 %v1919_v0 }
 0xc0a   :  { %v1830_v1 = vpop.f32.mrb[20].mxu0 }
 0xc0b   :  { %v1834_v2 = vadd.f32 %v1830_v1, %v1590_v34  ;;  %v2291_v3 = vpop.f32.mrb[21].mxu0 }
 0xc67   :  { %v1921_v8 = vpop.xlane.xlu0 %1920 }
 0xc68   :  { %2358 = vrcp.f32 %v1921_v8 }
 0xc72   :  { %v2359_v48 = vpop.eup %2358 }
 0xc73   :  { %v1923_v4 = vmul.f32 %v2359_v48, %v1921_v8 }
 0xc75   :  { %v1924_v6 = vsub.f32 2.0, %v1923_v4 }
 0xc77   :  { %v1925_v7 = vmul.f32 %v2359_v48, %v1924_v6 }
 0xcac   :  { %v1998_v9 = vpop.f32.mrb[22].mxu0 }
 0xcad   :  { %v2002_v39 = vmul.f32 %v1998_v9, %v1925_v7  ;;  %v2301_v10 = vpop.f32.mrb[23].mxu0 }
 0xcaf   :  { %2305 = vmatmul.mubr.msk.f32.vlgmr.msra.gmra.mrb[24].mxu1 %vm133_vm2, %v2002_v39 }
 0xd82   :  { %v2072_v12 = vpop.f32.mrb[24].mxu1 }
 0xd83   :  { %v2076_v15 = vadd.f32 %v2072_v12, %v1834_v2  ;;  %v2306_v16 = vpop.f32.mrb[25].mxu1 }
 0xd85   :  { %v2077_v18 = vadd.f32 %v2615_v5, %v2076_v15 }
 0xd87   :  { %2078 = vst.msk [vmem:[%s2671_s6 + $0x8] sm:$0xff] %vm41_vm0, %v2077_v18 }

</bundles_post_ra>
